<compile_context>
chip_gen: v7x
topology: tpu7x:2x2x1
jax: 0.10.0
libtpu: 0.0.40
codegen_flags: <defaults>
</compile_context>

<pallas_src>
import jax
import jax.numpy as jnp
from jax.experimental import pallas as pl
from jax.experimental.pallas import tpu as pltpu

_A = 0.117071
_B = 0.5
_C = 0.375373

_MIN_SPLIT_BYTES = 512 * 1024    # above this, never run a single-step grid
_MAX_LANE = 8192                 # widest lane-dense last dim we will pick


def _cdiv(a, b):
    return -(-a // b)


def _approx_relu_kernel(x_ref, o_ref):
    # Widen to f32 inside the kernel; VPU cost is fully hidden behind the HBM DMA.
    x = x_ref[...].astype(jnp.float32)
    # Horner form: 2 mul + 2 add per element.
    o_ref[...] = ((_A * x + _B) * x + _C).astype(o_ref.dtype)


def _chip_block_params():
    """(block_bytes, vmem_limit_bytes) sized for this TPU generation's VMEM."""
    vmem_cap = None
    try:
        vmem_cap = pltpu.get_tpu_info().vmem_capacity_bytes
    except Exception:
        vmem_cap = None
    if vmem_cap is not None and vmem_cap > 64 * 1024 * 1024:
        # v5e / v6e: 128 MiB physical VMEM -> bigger blocks, bigger scoped limit.
        return 16 * 1024 * 1024, 80 * 1024 * 1024
    # v7x (64 MiB VMEM per TensorCore) or unknown chip: stay conservative.
    # 8 MiB blocks -> 32 MiB double-buffered in+out, 40 MiB scoped leaves headroom.
    return 8 * 1024 * 1024, 40 * 1024 * 1024


def _pick_lane(n, sublane):
    """Widest lane (multiple of 128 dividing n) that keeps rows a dense multiple of the
    sublane tile where possible — avoids sublane-padded vregs and masked stores."""
    if n % 128 != 0:
        return None
    m = n // 128
    best_lane, best_key = None, None
    for d in range(1, min(m, _MAX_LANE // 128) + 1):
        if m % d:
            continue
        lane = 128 * d
        rows = m // d
        key = (rows % sublane == 0, rows >= sublane, lane)
        if best_key is None or key > best_key:
            best_key, best_lane = key, lane
    return best_lane


def _approx_relu_aligned(x_flat, *, block_bytes, vmem_limit_bytes, inplace=False):
    """Run the Pallas kernel on a flat array whose element count is a multiple of 128."""
    n = x_flat.size
    dtype = x_flat.dtype
    itemsize = jnp.dtype(dtype).itemsize
    sublane = max(8, 32 // itemsize)          # 8 for f32, 16 for bf16, 32 for int8

    lane = _pick_lane(n, sublane)
    rows = n // lane
    x2d = x_flat.reshape(rows, lane)

    bytes_total = n * itemsize
    rows_per_block_cap = max(
        sublane, (block_bytes // (lane * itemsize)) // sublane * sublane)

    if bytes_total >= _MIN_SPLIT_BYTES and rows >= 2 * sublane:
        # >=4 steps (even) so both v7x TCs get work and DMA-in/compute/DMA-out overlap.
        steps = max(4, _cdiv(rows, rows_per_block_cap))
        if steps % 2:
            steps += 1
        steps = min(steps, rows // sublane)
        tile_rows = min(rows, _cdiv(_cdiv(rows, steps), sublane) * sublane)
    else:
        # Tiny array: a single block covering the full dims is always legal.
        tile_rows = rows if rows <= rows_per_block_cap else rows_per_block_cap

    grid = (_cdiv(rows, tile_rows),)

    out2d = pl.pallas_call(
        _approx_relu_kernel,
        out_shape=jax.ShapeDtypeStruct((rows, lane), dtype),
        grid_spec=pltpu.PrefetchScalarGridSpec(
            num_scalar_prefetch=0,
            grid=grid,
            in_specs=[pl.BlockSpec((tile_rows, lane), lambda i: (i, 0))],
            out_specs=pl.BlockSpec((tile_rows, lane), lambda i: (i, 0)),
        ),
        compiler_params=pltpu.CompilerParams(
            dimension_semantics=("parallel",),       # v7x shards the grid across both TCs
            vmem_limit_bytes=vmem_limit_bytes,
        ),
        cost_estimate=pl.CostEstimate(
            flops=4 * n, transcendentals=0, bytes_accessed=2 * n * itemsize),
        input_output_aliases=({0: 0} if inplace else {}),
    )(x2d)
    return out2d.reshape(-1)


def approx_relu(x, *, block_bytes=None, inplace=False):
    """approxRELU forward: 0.117071*x^2 + 0.5*x + 0.375373 (elementwise)."""
    orig_shape = x.shape
    orig_dtype = x.dtype
    n = x.size
    if n == 0:
        return x

    chip_block, vmem_limit = _chip_block_params()
    if block_bytes is None:
        block_bytes = chip_block

    x_flat = jnp.ravel(x)
    n_aligned = n - (n % 128)

    if n_aligned == n:
        out_flat = _approx_relu_aligned(
            x_flat, block_bytes=block_bytes, vmem_limit_bytes=vmem_limit, inplace=inplace)
        return out_flat.reshape(orig_shape)

    # Ragged tail (<128 elems): no jnp.pad / post-slice HBM passes — run the kernel on the
    # aligned prefix, finish the tail with a trivial expression, stitch once.
    tail = x_flat[n_aligned:].astype(jnp.float32)
    tail_out = ((_A * tail + _B) * tail + _C).astype(orig_dtype)
    if n_aligned == 0:
        return tail_out.reshape(orig_shape)
    head_out = _approx_relu_aligned(
        x_flat[:n_aligned], block_bytes=block_bytes, vmem_limit_bytes=vmem_limit)
    out_flat = jnp.concatenate([head_out, tail_out])
    return out_flat.reshape(orig_shape)


if __name__ == "__main__":
    key = jax.random.PRNGKey(0)
    # small NCHW-like activation tensor, consistent with typical conv inputs
    x = jax.random.normal(key, (2, 4, 16, 16), dtype=jnp.float32)
    out = jax.block_until_ready(approx_relu(x))
    ref = _A * x * x + _B * x + _C
    assert out.shape == x.shape and out.dtype == x.dtype
    assert jnp.max(jnp.abs(out - ref)) < 1e-5

    # ragged element count -> exercises the zero-pad prefix/tail path
    x2 = jax.random.normal(jax.random.PRNGKey(1), (3, 5, 7), dtype=jnp.float32)
    out2 = jax.block_until_ready(approx_relu(x2))
    ref2 = _A * x2 * x2 + _B * x2 + _C
    assert out2.shape == x2.shape
    assert jnp.max(jnp.abs(out2 - ref2)) < 1e-5

    # bf16 HBM I/O with f32 compute inside the kernel
    x3 = jax.random.normal(jax.random.PRNGKey(2), (2, 8, 32), dtype=jnp.bfloat16)
    out3 = jax.block_until_ready(approx_relu(x3))
    x3f = x3.astype(jnp.float32)
    ref3 = ((_A * x3f + _B) * x3f + _C).astype(jnp.bfloat16)
    assert out3.dtype == jnp.bfloat16
    assert jnp.max(jnp.abs(out3.astype(jnp.float32) - ref3.astype(jnp.float32))) < 5e-2

    # 512 KiB f32 -> exercises the multi-step (>=2 blocks, "parallel") grid path
    x4 = jax.random.normal(jax.random.PRNGKey(3), (256, 512), dtype=jnp.float32)
    out4 = jax.block_until_ready(approx_relu(x4))
    ref4 = _A * x4 * x4 + _B * x4 + _C
    assert jnp.max(jnp.abs(out4 - ref4)) < 1e-5

    print("KERNEL_OK")
</pallas_src>

<mosaic_0001>
module attributes {stable_mosaic.version = 11 : i64} {
  func.func @_approx_relu_kernel(%arg0: i32, %arg1: memref<8x256xf32, #tpu.memory_space<vmem>>, %arg2: memref<8x256xf32, #tpu.memory_space<vmem>>) attributes {dimension_semantics = [#tpu.dimension_semantics<parallel>], iteration_bounds = array<i64: 1>, scalar_prefetch = 0 : i64, scratch_operands = 0 : i64, tpu.core_type = #tpu.core_type<tc>, window_params = [{transform_indices = @transform_0, window_bounds = array<i64: 8, 256>}, {transform_indices = @transform_1, window_bounds = array<i64: 8, 256>}]} {
    %c0 = arith.constant 0 : index
    %c0_0 = arith.constant 0 : index
    %0 = vector.load %arg1[%c0, %c0_0] : memref<8x256xf32, #tpu.memory_space<vmem>>, vector<8x256xf32>
    %cst = arith.constant 1.170710e-01 : f32
    %1 = vector.broadcast %cst : f32 to vector<8x256xf32>
    %2 = arith.mulf %1, %0 : vector<8x256xf32>
    %cst_1 = arith.constant 5.000000e-01 : f32
    %3 = vector.broadcast %cst_1 : f32 to vector<8x256xf32>
    %4 = arith.addf %2, %3 : vector<8x256xf32>
    %5 = arith.mulf %4, %0 : vector<8x256xf32>
    %cst_2 = arith.constant 3.753730e-01 : f32
    %6 = vector.broadcast %cst_2 : f32 to vector<8x256xf32>
    %7 = arith.addf %5, %6 : vector<8x256xf32>
    %c0_3 = arith.constant 0 : index
    %c0_4 = arith.constant 0 : index
    %8 = vector.load %arg2[%c0_3, %c0_4] : memref<8x256xf32, #tpu.memory_space<vmem>>, vector<8x256xf32>
    tpu.vector_store %arg2[%c0_3, %c0_4], %7 {strides = array<i32>} : memref<8x256xf32, #tpu.memory_space<vmem>>, vector<8x256xf32>,
    return
  }
  func.func @transform_0(%arg0: i32) -> (i32, i32) {
    %c0_i32 = arith.constant 0 : i32
    %c0_i32_0 = arith.constant 0 : i32
    return %arg0, %c0_i32 : i32, i32
  }
  func.func @transform_1(%arg0: i32) -> (i32, i32) {
    %c0_i32 = arith.constant 0 : i32
    %c0_i32_0 = arith.constant 0 : i32
    return %arg0, %c0_i32 : i32, i32
  }
}

</mosaic_0001>

<bundles_post_ra>
// kernel: tpu_custom_call.1
= control target key start
LH: loop header
LB: loop body
LE: loop exit
PB: predicated region body
PF: predicated region fallthrough
CT: control target
= control target key end

     0   :  { %6 = vsyncpa [#allocation3], 0  ;;  %s134_s0 = inlined_call_operand.hbm [shape: f32[8,256], index: 0, kind: input, shape index: {}]   ;;  %s135_s1 = inlined_call_operand.hbm [shape: f32[8,256], index: 1, kind: output, shape index: {}]  }
   0x1   :  { %7 = vsyncpa [#allocation4], 0  ;;  %s98_s6 = smov [#allocation2]   ;;  %s50_s10 = scalar_lea.hbm %s134_s0, 256 }
   0x2   :  { %s14_s7 = sshll.u32 %s98_s6, 4  ;;  %p51_p0 = scmp.ne.s32.totalorder %s134_s0, %s50_s10  ;;  %s15_s7 = int_to_ptr.vmem [resolvable:$true] %s14_s7 }
   0x3   :  { %p54_p1 = scmp.lt.u32.totalorder %s50_s10, %s134_s0 }
   0x5   :  { %p56_p2 = pnand %p54_p1, %p51_p0 }
   0x7   :  { %59 = shalt.err (!%p56_p2)
}
   0x8   :  { %s60_s15 = scalar_lea.vmem %s15_s7, 256  ;;  %p65_p4 = scmp.lt.s32.totalorder %s15_s7, %s15_s7 }
   0x9   :  { %p61_p3 = scmp.ne.s32.totalorder %s15_s7, %s60_s15  ;;  %p66_p5 = scmp.lt.s32.totalorder %s60_s15, %s60_s15 }
   0xb   :  { %p67_p6 = por %p66_p5, %p65_p4 }
   0xd   :  { %p68_p7 = pnand %p67_p6, %p61_p3 }
   0xf   :  { %71 = shalt.err (!%p68_p7)
}
  0x10   :  { %17 = dma.hbm_to_vmem [thread:$0]  %s134_s0, 256, %s15_s7, [#allocation3]  }
  0x11   :  { %94 = dma.done.wait [#allocation3], 256  }
  0x12   :  { %95 = vsyncadd [#allocation3], 4294967040  ;;  %v21_v0 = vld [vmem:[#allocation2] sm:$0xff]  ;;  %v22_v1 = vld [vmem:[#allocation2 + $0x8] sm:$0xff]  ;;  %s99_s18 = smov [#allocation5]  }
  0x13   :  { %v23_v2 = vmul.f32 0.117071, %v21_v0  ;;  %v24_v3 = vmul.f32 0.117071, %v22_v1  ;;  %s39_s19 = sshll.u32 %s99_s18, 4  ;;  %s40_s19 = int_to_ptr.vmem [resolvable:$true] %s39_s19 }
  0x14   :  { %s72_s20 = scalar_lea.vmem %s40_s19, 256  ;;  %p77_p9 = scmp.lt.s32.totalorder %s40_s19, %s40_s19 }
  0x15   :  { %v25_v4 = vadd.f32 0.5, %v23_v2  ;;  %v26_v5 = vadd.f32 0.5, %v24_v3  ;;  %p73_p8 = scmp.ne.s32.totalorder %s40_s19, %s72_s20  ;;  %p78_p10 = scmp.lt.s32.totalorder %s72_s20, %s72_s20 }
  0x17   :  { %v27_v6 = vmul.f32 %v25_v4, %v21_v0  ;;  %v28_v7 = vmul.f32 %v26_v5, %v22_v1  ;;  %p79_p11 = por %p78_p10, %p77_p9 }
  0x19   :  { %v29_v8 = vadd.f32 0.375373, %v27_v6  ;;  %v30_v9 = vadd.f32 0.375373, %v28_v7  ;;  %p80_p12 = pnand %p79_p11, %p73_p8 }
  0x1b   :  { %31 = vst [vmem:[#allocation5] sm:$0xff] %v29_v8  ;;  %32 = vst [vmem:[#allocation5 + $0x8] sm:$0xff] %v30_v9 }
  0x1c   :  { %83 = shalt.err (!%p80_p12)
}
  0x1d   :  { %s84_s22 = scalar_lea.hbm %s135_s1, 256 }
  0x1e   :  { %p85_p13 = scmp.ne.s32.totalorder %s135_s1, %s84_s22  ;;  %p88_p0 = scmp.lt.u32.totalorder %s84_s22, %s135_s1 }
  0x20   :  { %p90_p1 = pnand %p88_p0, %p85_p13 }
  0x22   :  { %93 = shalt.err (!%p90_p1)
}
  0x23   :  { %42 = dma.vmem_to_hbm [thread:$0]  %s40_s19, 256, %s135_s1, [#allocation4]  }
  0x24   :  { %96 = dma.done.wait [#allocation4], 256  }
  0x25   :  { %97 = vsyncadd [#allocation4], 4294967040 }
  0x26   :  { %46 = vsyncpa [#allocation3], 1 }
  0x27   :  { %47 = vsyncpa [#allocation4], 1 }

</bundles_post_ra>
